<compile_context>
chip_gen: v6e
topology: v6e:2x2x1
jax: 0.10.0
libtpu: 0.0.40
codegen_flags: <defaults>
</compile_context>

<pallas_src>
import functools

import jax
import jax.numpy as jnp
from jax.experimental import pallas as pl
from jax.experimental.pallas import tpu as pltpu


def pointnet_kernel(p_ref,
                    wpos_ref, wstk_ref, wc_ref,
                    bpos_ref, bstk_ref, bc_ref,
                    out_ref,
                    *, compute_dtype):
    x = p_ref[...]                                     # (BB, T, D) f32
    BB, T, D = x.shape

    def relu(v):
        return jnp.maximum(v, 0.0)

    def mm(a, w):
        # 2D MXU matmul, f32 accumulation.  Weights were pre-cast to
        # compute_dtype in the wrapper, so only activations are cast here
        # (no-op when compute_dtype == f32).
        return jnp.dot(a.astype(compute_dtype), w,
                       preferred_element_type=jnp.float32)

    def mm3d(a3, w):
        # (BB, T, F) @ (F, G) -> (BB, T, G) via a tall (BB*T, F) matmul so the
        # MXU M dimension is filled.  Layout-preserving when T % 8 == 0.
        F = a3.shape[-1]
        G = w.shape[-1]
        return mm(a3.reshape(BB * T, F), w).reshape(BB, T, G)

    # --- fc_pos: single MXU matmul (K = D = 3 pads to one MXU pass; keeps the
    # VALU/XLU slots, the binding resource here, free).
    net = mm3d(x, wpos_ref[...]) + bpos_ref[...]       # (BB, T, 2H)

    # --- fc_0(relu(net)): dense 2H -> H.
    net = mm3d(relu(net), wstk_ref[0]) + bstk_ref[0]   # (BB, T, H)

    # --- fc_1..fc_3: exact split-weight form of fc(relu(cat([net, pooled]))).
    # relu(max(net)) == max(relu(net)); bias folded into the small pooled term.
    def pool_fc(net, w, b):
        H = w.shape[1]
        a = relu(net)                                  # (BB, T, H)
        pooled = jnp.max(a, axis=1)                    # (BB, H) == relu(max(net))
        top = mm3d(a, w[:H, :])                        # (BB, T, H)
        bot = mm(pooled, w[H:, :]) + b                 # (BB, H), bias folded here
        return top + bot[:, None, :]                   # broadcast over T

    net = pool_fc(net, wstk_ref[1], bstk_ref[1])
    net = pool_fc(net, wstk_ref[2], bstk_ref[2])
    net = pool_fc(net, wstk_ref[3], bstk_ref[3])

    # --- global max pool over points, ReLU on the tiny pooled result, fc_c.
    final = jnp.maximum(jnp.max(net, axis=1), 0.0)     # (BB, H)
    out_ref[...] = mm(final, wc_ref[...]) + bc_ref[...]  # (BB, c_dim)


def simple_pointnet_pallas(p, params, *, batch_block=None,
                           compute_dtype=jnp.float32):
    """p: (B, T, D) float32. params: (in,out) weights and (1,out) biases."""
    B, T, D = p.shape
    c_dim = params["wc"].shape[1]

    # ---- batch-block heuristic --------------------------------------------
    #  * bb % 8 == 0 (or bb == B): keeps the (bb, c_dim) output block legal
    #    under the (8, 128) sublane rule.
    #  * bb * T <= ~4096 rows: amortizes the ~0.35us/step overhead and fills
    #    the MXU M dim while staying at a few MB of VMEM (well under the
    #    scoped limit on v5e/v6e/v7x).
    #  * B // bb >= 2: lets the "parallel" grid axis shard across both
    #    TensorCores on v7x (single-TC v5e/v6e are unaffected).
    if batch_block is None:
        target_rows = 4096
        cands = [c for c in range(8, B, 8) if B % c == 0 and B // c >= 2]
        fitting = [c for c in cands if c * T <= target_rows]
        if fitting:
            batch_block = max(fitting)
        elif cands:
            batch_block = min(cands)      # very large T: smallest legal block
        else:
            batch_block = B               # tiny/odd batch: whole thing, 1 step
    bb = batch_block
    assert B % bb == 0, "batch_block must divide the batch size"
    assert bb == B or bb % 8 == 0, "batch_block must be a multiple of 8 or == B"

    # ---- pack weights / biases into a few VMEM-resident operands -----------
    # Weights are pre-cast to the matmul compute dtype (so no per-step casts of
    # resident blocks inside the kernel); biases stay f32 (f32 accumulation).
    w_dtype = compute_dtype
    wpos = params["wpos"].astype(w_dtype)                             # (D, 2H)
    wstk = jnp.stack([params["w0"], params["w1"],
                      params["w2"], params["w3"]]).astype(w_dtype)    # (4, 2H, H)
    wc = params["wc"].astype(w_dtype)                                 # (H, c_dim)
    bpos = params["bpos"].astype(jnp.float32)                         # (1, 2H)
    bstk = jnp.stack([params["b0"], params["b1"],
                      params["b2"], params["b3"]]).astype(jnp.float32)  # (4,1,H)
    bc = params["bc"].astype(jnp.float32)                             # (1, c_dim)
    weight_args = [wpos, wstk, wc, bpos, bstk, bc]

    # Full-array VMEM-resident blocks with constant index maps (no re-copy).
    full = lambda arr: pl.BlockSpec(arr.shape, lambda b: (0,) * arr.ndim)

    kernel = functools.partial(pointnet_kernel, compute_dtype=compute_dtype)

    return pl.pallas_call(
        kernel,
        out_shape=jax.ShapeDtypeStruct((B, c_dim), jnp.float32),
        grid_spec=pltpu.PrefetchScalarGridSpec(
            num_scalar_prefetch=0,
            grid=(B // bb,),
            in_specs=[pl.BlockSpec((bb, T, D), lambda b: (b, 0, 0))]
                     + [full(a) for a in weight_args],
            out_specs=pl.BlockSpec((bb, c_dim), lambda b: (b, 0)),
        ),
        compiler_params=pltpu.CompilerParams(
            dimension_semantics=("parallel",)),
    )(p, *weight_args)


def simple_pointnet_ref(p, params):
    """Pure-JAX reference mirroring the PyTorch forward."""
    relu = lambda v: jnp.maximum(v, 0.0)
    net = p @ params["wpos"] + params["bpos"]                  # (B, T, 2H)
    net = relu(net) @ params["w0"] + params["b0"]              # (B, T, H)
    for k in ("1", "2", "3"):
        pooled = jnp.max(net, axis=1, keepdims=True)
        pooled = jnp.broadcast_to(pooled, net.shape)
        cat = jnp.concatenate([net, pooled], axis=2)
        net = relu(cat) @ params["w" + k] + params["b" + k]
    net = jnp.max(net, axis=1)                                 # (B, H)
    return relu(net) @ params["wc"] + params["bc"]             # (B, c_dim)


def init_params(key, dim=3, hidden_dim=32, c_dim=16):
    """Deterministic PyTorch-Linear-style init (uniform +/- 1/sqrt(fan_in))."""
    shapes = {
        "wpos": (dim, 2 * hidden_dim),
        "w0": (2 * hidden_dim, hidden_dim),
        "w1": (2 * hidden_dim, hidden_dim),
        "w2": (2 * hidden_dim, hidden_dim),
        "w3": (2 * hidden_dim, hidden_dim),
        "wc": (hidden_dim, c_dim),
    }
    params = {}
    keys = jax.random.split(key, 2 * len(shapes))
    for i, (name, (fan_in, fan_out)) in enumerate(shapes.items()):
        bound = 1.0 / (fan_in ** 0.5)
        params[name] = jax.random.uniform(
            keys[2 * i], (fan_in, fan_out), jnp.float32, -bound, bound)
        params["b" + name[1:]] = jax.random.uniform(
            keys[2 * i + 1], (1, fan_out), jnp.float32, -bound, bound)
    return params


if __name__ == "__main__":
    B, T, D = 2, 16, 3
    hidden_dim, c_dim = 32, 16

    key = jax.random.PRNGKey(0)
    kp, kw = jax.random.split(key)
    p = jax.random.normal(kp, (B, T, D), dtype=jnp.float32)
    params = init_params(kw, dim=D, hidden_dim=hidden_dim, c_dim=c_dim)

    ref = simple_pointnet_ref(p, params)

    # f32 matmul path (default; exact vs reference).
    out = jax.block_until_ready(simple_pointnet_pallas(p, params))
    assert out.shape == (B, c_dim)
    assert jnp.allclose(out, ref, atol=1e-4, rtol=1e-4), "f32 mismatch vs reference"

    # bf16 matmul path (v6e/v7x MXU fast path), f32 accumulation; looser tol.
    out_bf16 = jax.block_until_ready(
        simple_pointnet_pallas(p, params, compute_dtype=jnp.bfloat16))
    assert jnp.allclose(out_bf16, ref, atol=5e-2, rtol=5e-2), "bf16 mismatch vs reference"

    print("KERNEL_OK")
</pallas_src>

<mosaic_0001>
module attributes {stable_mosaic.version = 11 : i64} {
  func.func @pointnet_kernel(%arg0: i32, %arg1: memref<2x16x3xf32, #tpu.memory_space<vmem>>, %arg2: memref<3x64xf32, #tpu.memory_space<vmem>>, %arg3: memref<4x64x32xf32, #tpu.memory_space<vmem>>, %arg4: memref<32x16xf32, #tpu.memory_space<vmem>>, %arg5: memref<1x64xf32, #tpu.memory_space<vmem>>, %arg6: memref<4x1x32xf32, #tpu.memory_space<vmem>>, %arg7: memref<1x16xf32, #tpu.memory_space<vmem>>, %arg8: memref<2x16xf32, #tpu.memory_space<vmem>>) attributes {dimension_semantics = [#tpu.dimension_semantics<parallel>], iteration_bounds = array<i64: 1>, scalar_prefetch = 0 : i64, scratch_operands = 0 : i64, tpu.core_type = #tpu.core_type<tc>, window_params = [{transform_indices = @transform_0, window_bounds = array<i64: 2, 16, 3>}, {pipeline_mode = #tpu.pipeline_mode<synchronous>, transform_indices = @transform_1, window_bounds = array<i64: 3, 64>}, {pipeline_mode = #tpu.pipeline_mode<synchronous>, transform_indices = @transform_2, window_bounds = array<i64: 4, 64, 32>}, {pipeline_mode = #tpu.pipeline_mode<synchronous>, transform_indices = @transform_3, window_bounds = array<i64: 32, 16>}, {pipeline_mode = #tpu.pipeline_mode<synchronous>, transform_indices = @transform_4, window_bounds = array<i64: 1, 64>}, {pipeline_mode = #tpu.pipeline_mode<synchronous>, transform_indices = @transform_5, window_bounds = array<i64: 4, 1, 32>}, {pipeline_mode = #tpu.pipeline_mode<synchronous>, transform_indices = @transform_6, window_bounds = array<i64: 1, 16>}, {transform_indices = @transform_7, window_bounds = array<i64: 2, 16>}]} {
    %c0 = arith.constant 0 : index
    %c0_0 = arith.constant 0 : index
    %c0_1 = arith.constant 0 : index
    %0 = vector.load %arg1[%c0, %c0_0, %c0_1] : memref<2x16x3xf32, #tpu.memory_space<vmem>>, vector<2x16x3xf32>
    %c0_2 = arith.constant 0 : index
    %c0_3 = arith.constant 0 : index
    %1 = vector.load %arg2[%c0_2, %c0_3] : memref<3x64xf32, #tpu.memory_space<vmem>>, vector<3x64xf32>
    %2 = vector.shape_cast %0 : vector<2x16x3xf32> to vector<32x3xf32>
    %cst = arith.constant dense<0.000000e+00> : vector<32x64xf32>
    %3 = tpu.matmul %2, %1, %cst {dimension_numbers = #tpu.dot_dimension_numbers<[1], [0], [0], [1], [0, 0, 1, 1], [], []>} : vector<32x3xf32>, vector<3x64xf32>, vector<32x64xf32> -> vector<32x64xf32>
    %4 = vector.shape_cast %3 : vector<32x64xf32> to vector<2x16x64xf32>
    %c0_4 = arith.constant 0 : index
    %c0_5 = arith.constant 0 : index
    %5 = vector.load %arg5[%c0_4, %c0_5] : memref<1x64xf32, #tpu.memory_space<vmem>>, vector<1x64xf32>
    %6 = vector.shape_cast %5 : vector<1x64xf32> to vector<1x1x64xf32>
    %7 = vector.broadcast %6 : vector<1x1x64xf32> to vector<2x16x64xf32>
    %8 = arith.addf %4, %7 : vector<2x16x64xf32>
    %cst_6 = arith.constant 0.000000e+00 : f32
    %9 = vector.broadcast %cst_6 : f32 to vector<2x16x64xf32>
    %10 = arith.maximumf %8, %9 : vector<2x16x64xf32>
    %c0_7 = arith.constant 0 : index
    %c0_8 = arith.constant 0 : index
    %c0_9 = arith.constant 0 : index
    %11 = vector.load %arg3[%c0_7, %c0_8, %c0_9] : memref<4x64x32xf32, #tpu.memory_space<vmem>>, vector<1x64x32xf32>
    %12 = vector.shape_cast %11 : vector<1x64x32xf32> to vector<64x32xf32>
    %13 = vector.shape_cast %10 : vector<2x16x64xf32> to vector<32x64xf32>
    %cst_10 = arith.constant dense<0.000000e+00> : vector<32x32xf32>
    %14 = tpu.matmul %13, %12, %cst_10 {dimension_numbers = #tpu.dot_dimension_numbers<[1], [0], [0], [1], [0, 0, 1, 1], [], []>} : vector<32x64xf32>, vector<64x32xf32>, vector<32x32xf32> -> vector<32x32xf32>
    %15 = vector.shape_cast %14 : vector<32x32xf32> to vector<2x16x32xf32>
    %c0_11 = arith.constant 0 : index
    %c0_12 = arith.constant 0 : index
    %c0_13 = arith.constant 0 : index
    %16 = vector.load %arg6[%c0_11, %c0_12, %c0_13] : memref<4x1x32xf32, #tpu.memory_space<vmem>>, vector<1x1x32xf32>
    %17 = vector.shape_cast %16 : vector<1x1x32xf32> to vector<1x32xf32>
    %18 = vector.shape_cast %17 : vector<1x32xf32> to vector<1x1x32xf32>
    %19 = vector.broadcast %18 : vector<1x1x32xf32> to vector<2x16x32xf32>
    %20 = arith.addf %15, %19 : vector<2x16x32xf32>
    %c1 = arith.constant 1 : index
    %c0_14 = arith.constant 0 : index
    %c0_15 = arith.constant 0 : index
    %21 = vector.load %arg3[%c1, %c0_14, %c0_15] : memref<4x64x32xf32, #tpu.memory_space<vmem>>, vector<1x64x32xf32>
    %22 = vector.shape_cast %21 : vector<1x64x32xf32> to vector<64x32xf32>
    %c1_16 = arith.constant 1 : index
    %c0_17 = arith.constant 0 : index
    %c0_18 = arith.constant 0 : index
    %23 = vector.load %arg6[%c1_16, %c0_17, %c0_18] : memref<4x1x32xf32, #tpu.memory_space<vmem>>, vector<1x1x32xf32>
    %24 = vector.shape_cast %23 : vector<1x1x32xf32> to vector<1x32xf32>
    %cst_19 = arith.constant 0.000000e+00 : f32
    %25 = vector.broadcast %cst_19 : f32 to vector<2x16x32xf32>
    %26 = arith.maximumf %20, %25 : vector<2x16x32xf32>
    %cst_20 = arith.constant dense<0xFF800000> : vector<2x32xf32>
    %27 = vector.multi_reduction <maximumf>, %26, %cst_20 [1] : vector<2x16x32xf32> to vector<2x32xf32>
    %28 = vector.extract_strided_slice %22 {offsets = [0, 0], sizes = [32, 32], strides = [1, 1]} : vector<64x32xf32> to vector<32x32xf32>
    %29 = vector.shape_cast %26 : vector<2x16x32xf32> to vector<32x32xf32>
    %cst_21 = arith.constant dense<0.000000e+00> : vector<32x32xf32>
    %30 = tpu.matmul %29, %28, %cst_21 {dimension_numbers = #tpu.dot_dimension_numbers<[1], [0], [0], [1], [0, 0, 1, 1], [], []>} : vector<32x32xf32>, vector<32x32xf32>, vector<32x32xf32> -> vector<32x32xf32>
    %31 = vector.shape_cast %30 : vector<32x32xf32> to vector<2x16x32xf32>
    %32 = vector.extract_strided_slice %22 {offsets = [32, 0], sizes = [32, 32], strides = [1, 1]} : vector<64x32xf32> to vector<32x32xf32>
    %cst_22 = arith.constant dense<0.000000e+00> : vector<2x32xf32>
    %33 = tpu.matmul %27, %32, %cst_22 {dimension_numbers = #tpu.dot_dimension_numbers<[1], [0], [0], [1], [0, 0, 1, 1], [], []>} : vector<2x32xf32>, vector<32x32xf32>, vector<2x32xf32> -> vector<2x32xf32>
    %34 = vector.broadcast %24 : vector<1x32xf32> to vector<2x32xf32>
    %35 = arith.addf %33, %34 : vector<2x32xf32>
    %36 = vector.shape_cast %35 : vector<2x32xf32> to vector<2x1x32xf32>
    %37 = vector.broadcast %36 : vector<2x1x32xf32> to vector<2x16x32xf32>
    %38 = arith.addf %31, %37 : vector<2x16x32xf32>
    %c2 = arith.constant 2 : index
    %c0_23 = arith.constant 0 : index
    %c0_24 = arith.constant 0 : index
    %39 = vector.load %arg3[%c2, %c0_23, %c0_24] : memref<4x64x32xf32, #tpu.memory_space<vmem>>, vector<1x64x32xf32>
    %40 = vector.shape_cast %39 : vector<1x64x32xf32> to vector<64x32xf32>
    %c2_25 = arith.constant 2 : index
    %c0_26 = arith.constant 0 : index
    %c0_27 = arith.constant 0 : index
    %41 = vector.load %arg6[%c2_25, %c0_26, %c0_27] : memref<4x1x32xf32, #tpu.memory_space<vmem>>, vector<1x1x32xf32>
    %42 = vector.shape_cast %41 : vector<1x1x32xf32> to vector<1x32xf32>
    %cst_28 = arith.constant 0.000000e+00 : f32
    %43 = vector.broadcast %cst_28 : f32 to vector<2x16x32xf32>
    %44 = arith.maximumf %38, %43 : vector<2x16x32xf32>
    %cst_29 = arith.constant dense<0xFF800000> : vector<2x32xf32>
    %45 = vector.multi_reduction <maximumf>, %44, %cst_29 [1] : vector<2x16x32xf32> to vector<2x32xf32>
    %46 = vector.extract_strided_slice %40 {offsets = [0, 0], sizes = [32, 32], strides = [1, 1]} : vector<64x32xf32> to vector<32x32xf32>
    %47 = vector.shape_cast %44 : vector<2x16x32xf32> to vector<32x32xf32>
    %cst_30 = arith.constant dense<0.000000e+00> : vector<32x32xf32>
    %48 = tpu.matmul %47, %46, %cst_30 {dimension_numbers = #tpu.dot_dimension_numbers<[1], [0], [0], [1], [0, 0, 1, 1], [], []>} : vector<32x32xf32>, vector<32x32xf32>, vector<32x32xf32> -> vector<32x32xf32>
    %49 = vector.shape_cast %48 : vector<32x32xf32> to vector<2x16x32xf32>
    %50 = vector.extract_strided_slice %40 {offsets = [32, 0], sizes = [32, 32], strides = [1, 1]} : vector<64x32xf32> to vector<32x32xf32>
    %cst_31 = arith.constant dense<0.000000e+00> : vector<2x32xf32>
    %51 = tpu.matmul %45, %50, %cst_31 {dimension_numbers = #tpu.dot_dimension_numbers<[1], [0], [0], [1], [0, 0, 1, 1], [], []>} : vector<2x32xf32>, vector<32x32xf32>, vector<2x32xf32> -> vector<2x32xf32>
    %52 = vector.broadcast %42 : vector<1x32xf32> to vector<2x32xf32>
    %53 = arith.addf %51, %52 : vector<2x32xf32>
    %54 = vector.shape_cast %53 : vector<2x32xf32> to vector<2x1x32xf32>
    %55 = vector.broadcast %54 : vector<2x1x32xf32> to vector<2x16x32xf32>
    %56 = arith.addf %49, %55 : vector<2x16x32xf32>
    %c3 = arith.constant 3 : index
    %c0_32 = arith.constant 0 : index
    %c0_33 = arith.constant 0 : index
    %57 = vector.load %arg3[%c3, %c0_32, %c0_33] : memref<4x64x32xf32, #tpu.memory_space<vmem>>, vector<1x64x32xf32>
    %58 = vector.shape_cast %57 : vector<1x64x32xf32> to vector<64x32xf32>
    %c3_34 = arith.constant 3 : index
    %c0_35 = arith.constant 0 : index
    %c0_36 = arith.constant 0 : index
    %59 = vector.load %arg6[%c3_34, %c0_35, %c0_36] : memref<4x1x32xf32, #tpu.memory_space<vmem>>, vector<1x1x32xf32>
    %60 = vector.shape_cast %59 : vector<1x1x32xf32> to vector<1x32xf32>
    %cst_37 = arith.constant 0.000000e+00 : f32
    %61 = vector.broadcast %cst_37 : f32 to vector<2x16x32xf32>
    %62 = arith.maximumf %56, %61 : vector<2x16x32xf32>
    %cst_38 = arith.constant dense<0xFF800000> : vector<2x32xf32>
    %63 = vector.multi_reduction <maximumf>, %62, %cst_38 [1] : vector<2x16x32xf32> to vector<2x32xf32>
    %64 = vector.extract_strided_slice %58 {offsets = [0, 0], sizes = [32, 32], strides = [1, 1]} : vector<64x32xf32> to vector<32x32xf32>
    %65 = vector.shape_cast %62 : vector<2x16x32xf32> to vector<32x32xf32>
    %cst_39 = arith.constant dense<0.000000e+00> : vector<32x32xf32>
    %66 = tpu.matmul %65, %64, %cst_39 {dimension_numbers = #tpu.dot_dimension_numbers<[1], [0], [0], [1], [0, 0, 1, 1], [], []>} : vector<32x32xf32>, vector<32x32xf32>, vector<32x32xf32> -> vector<32x32xf32>
    %67 = vector.shape_cast %66 : vector<32x32xf32> to vector<2x16x32xf32>
    %68 = vector.extract_strided_slice %58 {offsets = [32, 0], sizes = [32, 32], strides = [1, 1]} : vector<64x32xf32> to vector<32x32xf32>
    %cst_40 = arith.constant dense<0.000000e+00> : vector<2x32xf32>
    %69 = tpu.matmul %63, %68, %cst_40 {dimension_numbers = #tpu.dot_dimension_numbers<[1], [0], [0], [1], [0, 0, 1, 1], [], []>} : vector<2x32xf32>, vector<32x32xf32>, vector<2x32xf32> -> vector<2x32xf32>
    %70 = vector.broadcast %60 : vector<1x32xf32> to vector<2x32xf32>
    %71 = arith.addf %69, %70 : vector<2x32xf32>
    %72 = vector.shape_cast %71 : vector<2x32xf32> to vector<2x1x32xf32>
    %73 = vector.broadcast %72 : vector<2x1x32xf32> to vector<2x16x32xf32>
    %74 = arith.addf %67, %73 : vector<2x16x32xf32>
    %cst_41 = arith.constant dense<0xFF800000> : vector<2x32xf32>
    %75 = vector.multi_reduction <maximumf>, %74, %cst_41 [1] : vector<2x16x32xf32> to vector<2x32xf32>
    %cst_42 = arith.constant 0.000000e+00 : f32
    %76 = vector.broadcast %cst_42 : f32 to vector<2x32xf32>
    %77 = arith.maximumf %75, %76 : vector<2x32xf32>
    %c0_43 = arith.constant 0 : index
    %c0_44 = arith.constant 0 : index
    %78 = vector.load %arg4[%c0_43, %c0_44] : memref<32x16xf32, #tpu.memory_space<vmem>>, vector<32x16xf32>
    %cst_45 = arith.constant dense<0.000000e+00> : vector<2x16xf32>
    %79 = tpu.matmul %77, %78, %cst_45 {dimension_numbers = #tpu.dot_dimension_numbers<[1], [0], [0], [1], [0, 0, 1, 1], [], []>} : vector<2x32xf32>, vector<32x16xf32>, vector<2x16xf32> -> vector<2x16xf32>
    %c0_46 = arith.constant 0 : index
    %c0_47 = arith.constant 0 : index
    %80 = vector.load %arg7[%c0_46, %c0_47] : memref<1x16xf32, #tpu.memory_space<vmem>>, vector<1x16xf32>
    %81 = vector.broadcast %80 : vector<1x16xf32> to vector<2x16xf32>
    %82 = arith.addf %79, %81 : vector<2x16xf32>
    %c0_48 = arith.constant 0 : index
    %c0_49 = arith.constant 0 : index
    %83 = vector.load %arg8[%c0_48, %c0_49] : memref<2x16xf32, #tpu.memory_space<vmem>>, vector<2x16xf32>
    tpu.vector_store %arg8[%c0_48, %c0_49], %82 {strides = array<i32>} : memref<2x16xf32, #tpu.memory_space<vmem>>, vector<2x16xf32>,
    return
  }
  func.func @transform_0(%arg0: i32) -> (i32, i32, i32) {
    %c0_i32 = arith.constant 0 : i32
    %c0_i32_0 = arith.constant 0 : i32
    %c0_i32_1 = arith.constant 0 : i32
    return %arg0, %c0_i32, %c0_i32_0 : i32, i32, i32
  }
  func.func @transform_1(%arg0: i32) -> (i32, i32) {
    %c0_i32 = arith.constant 0 : i32
    %c0_i32_0 = arith.constant 0 : i32
    %c0_i32_1 = arith.constant 0 : i32
    return %c0_i32, %c0_i32_0 : i32, i32
  }
  func.func @transform_2(%arg0: i32) -> (i32, i32, i32) {
    %c0_i32 = arith.constant 0 : i32
    %c0_i32_0 = arith.constant 0 : i32
    %c0_i32_1 = arith.constant 0 : i32
    %c0_i32_2 = arith.constant 0 : i32
    return %c0_i32, %c0_i32_0, %c0_i32_1 : i32, i32, i32
  }
  func.func @transform_3(%arg0: i32) -> (i32, i32) {
    %c0_i32 = arith.constant 0 : i32
    %c0_i32_0 = arith.constant 0 : i32
    %c0_i32_1 = arith.constant 0 : i32
    return %c0_i32, %c0_i32_0 : i32, i32
  }
  func.func @transform_4(%arg0: i32) -> (i32, i32) {
    %c0_i32 = arith.constant 0 : i32
    %c0_i32_0 = arith.constant 0 : i32
    %c0_i32_1 = arith.constant 0 : i32
    return %c0_i32, %c0_i32_0 : i32, i32
  }
  func.func @transform_5(%arg0: i32) -> (i32, i32, i32) {
    %c0_i32 = arith.constant 0 : i32
    %c0_i32_0 = arith.constant 0 : i32
    %c0_i32_1 = arith.constant 0 : i32
    %c0_i32_2 = arith.constant 0 : i32
    return %c0_i32, %c0_i32_0, %c0_i32_1 : i32, i32, i32
  }
  func.func @transform_6(%arg0: i32) -> (i32, i32) {
    %c0_i32 = arith.constant 0 : i32
    %c0_i32_0 = arith.constant 0 : i32
    %c0_i32_1 = arith.constant 0 : i32
    return %c0_i32, %c0_i32_0 : i32, i32
  }
  func.func @transform_7(%arg0: i32) -> (i32, i32) {
    %c0_i32 = arith.constant 0 : i32
    %c0_i32_0 = arith.constant 0 : i32
    return %arg0, %c0_i32 : i32, i32
  }
}

</mosaic_0001>

<bundles_post_ra>
// kernel: tpu_custom_call.1
= control target key start
LH: loop header
LB: loop body
LE: loop exit
PB: predicated region body
PF: predicated region fallthrough
CT: control target
= control target key end

     0   :  { %vm45_vm0 = vcmask 1042432   ;;  %vm32_vm1 = vcmask 23552   ;;  %s1666_s0 = inlined_call_operand.vmem [shape: f32[2,16,3], index: 0, kind: input, shape index: {}]   ;;  %s1667_s1 = inlined_call_operand.vmem [shape: f32[3,64], index: 1, kind: input, shape index: {}]   ;;  %s1668_s2 = inlined_call_operand.vmem [shape: f32[4,64,32], index: 2, kind: input, shape index: {}]   ;;  %s1669_s3 = inlined_call_operand.vmem [shape: f32[32,16], index: 3, kind: input, shape index: {}]   ;;  %s1670_s4 = inlined_call_operand.vmem [shape: f32[1,64], index: 4, kind: input, shape index: {}]   ;;  %s1671_s5 = inlined_call_operand.vmem [shape: f32[4,1,32], index: 5, kind: input, shape index: {}]   ;;  %s1672_s6 = inlined_call_operand.vmem [shape: f32[1,16], index: 6, kind: input, shape index: {}]   ;;  %s1673_s7 = inlined_call_operand.hbm [shape: f32[2,16], index: 7, kind: output, shape index: {}]  }
   0x1   :  { %v31_v0 = vld [vmem:[%s1667_s1] sm:$0x7]  ;;  %v28_v2 = vld [vmem:[%s1666_s0 + $0x8] sm:$0xff]  ;;  %v29_v3 = vld [vmem:[%s1666_s0 + $0x10] sm:$0xff] }
   0x2   :  { %v27_v1 = vld [vmem:[%s1666_s0] sm:$0xff]  ;;  %1253 = vmatprep.subr.msk.mxu0 %vm45_vm0, %v31_v0  ;;  %v156_v4 = vld [vmem:[%s1668_s2 + $0x38] sm:$0xff]  ;;  %v155_v5 = vld [vmem:[%s1668_s2 + $0x30] sm:$0xff] }
   0x3   :  { %1255 = vmatprep.mubr.msk.f32.mxu0 %vm32_vm1, %v27_v1  ;;  %1254 = vmatpush3.msk.msra.mxu0 %vm45_vm0, %v31_v0  ;;  %v154_v6 = vld [vmem:[%s1668_s2 + $0x28] sm:$0xff] }
   0x4   :  { %1261 = vmatprep.subr.mxu1 %v156_v4  ;;  %1256 = vmatmul.mubr.msk.f32.vlgmr.msra.gmra.mxu0 %vm32_vm1, %v28_v2 }
   0x5   :  { %1262 = vmatpush3.msra.mxu1 %v156_v4 }
   0x6   :  { %12 = vsyncpa [#allocation3], 0  ;;  %1258 = vmatprep.mubr.msk.f32.mxu0 %vm32_vm1, %v29_v3  ;;  %v30_v7 = vld [vmem:[%s1666_s0 + $0x18] sm:$0xff]  ;;  %1263 = vmatprep.subr.mxu1 %v155_v5  ;;  %v153_v8 = vld [vmem:[%s1668_s2 + $0x20] sm:$0xff]  ;;  %vm157_vm2 = vcmask 523264   ;;  %v1395_v30 = vmov 0.0  }
   0x7   :  { %1264 = vmatpush3.msra.mxu1 %v155_v5  ;;  %v152_v9 = vld [vmem:[%s1668_s2 + $0x18] sm:$0xff]  ;;  %v151_v10 = vld [vmem:[%s1668_s2 + $0x10] sm:$0xff]  ;;  %v150_v11 = vld [vmem:[%s1668_s2 + $0x8] sm:$0xff]  ;;  %vm281_vm3 = vcmask 261120   ;;  %vm1396_vm4 = vmmov 0   ;;  %vm405_vm5 = vcmask 1041409  }
   0x8   :  { %1265 = vmatprep.subr.mxu1 %v154_v6  ;;  %1259 = vmatmul.mubr.msk.f32.gmra.mxu0 %vm32_vm1, %v30_v7  ;;  %v149_v12 = vld [vmem:[%s1668_s2] sm:$0xff]  ;;  %v1148_v26 = vld [vmem:[%s1668_s2 + $0x58] sm:$0xff]  ;;  %v1147_v27 = vld [vmem:[%s1668_s2 + $0x50] sm:$0xff]  ;;  %s1398_s13 = smov [#allocation2]   ;;  %vm1118_vm6 = vcmask 123904  }
   0x9   :  { %1266 = vmatpush3.msra.mxu1 %v154_v6  ;;  %v1139_v13 = vld [vmem:[%s1670_s4] ss:$0 sm:$0xff]  ;;  %1283 = vmatprep.subr.mxu0 %v1148_v26  ;;  %v1146_v28 = vld [vmem:[%s1668_s2 + $0x48] sm:$0xff]  ;;  %v1152_v41 = vld [vmem:[%s1668_s2 + $0x78] sm:$0xff]  ;;  %s1126_s14 = sshll.u32 %s1398_s13, 4  ;;  %s1127_s14 = int_to_ptr.vmem [resolvable:$true] %s1126_s14 }
   0xa   :  { %1267 = vmatprep.subr.mxu1 %v153_v8  ;;  %1284 = vmatpush3.msra.mxu0 %v1148_v26  ;;  %v1145_v29 = vld [vmem:[%s1668_s2 + $0x40] sm:$0xff]  ;;  %v1151_v47 = vld [vmem:[%s1668_s2 + $0x70] sm:$0xff]  ;;  %v1150_v50 = vld [vmem:[%s1668_s2 + $0x68] sm:$0xff]  ;;  %s1373_s15 = scalar_lea.vmem %s1127_s14, 32  ;;  %p1378_p1 = scmp.lt.s32.totalorder %s1127_s14, %s1127_s14 }
   0xb   :  { %1268 = vmatpush3.msra.mxu1 %v153_v8  ;;  %1285 = vmatprep.subr.mxu0 %v1147_v27  ;;  %v1144_v31 = vld [vmem:[%s1671_s5] ss:$0 sm:$0xff]  ;;  %v1163_v3 = vld [vmem:[%s1668_s2 + $0x98] sm:$0xff]  ;;  %v1162_v4 = vld [vmem:[%s1668_s2 + $0x90] sm:$0xff]  ;;  %p1374_p0 = scmp.ne.s32.totalorder %s1127_s14, %s1373_s15  ;;  %p1379_p2 = scmp.lt.s32.totalorder %s1373_s15, %s1373_s15 }
   0xc   :  { %1269 = vmatprep.subr.mxu1 %v152_v9  ;;  %1286 = vmatpush3.msra.mxu0 %v1147_v27  ;;  %v1149_v55 = vld [vmem:[%s1668_s2 + $0x60] sm:$0xff]  ;;  %v1161_v5 = vld [vmem:[%s1668_s2 + $0x88] sm:$0xff]  ;;  %v1167_v7 = vld [vmem:[%s1668_s2 + $0xb8] sm:$0xff] }
   0xd   :  { %1270 = vmatpush3.msra.mxu1 %v152_v9  ;;  %1287 = vmatprep.subr.mxu0 %v1146_v28  ;;  %v1160_v6 = vld [vmem:[%s1668_s2 + $0x80] sm:$0xff]  ;;  %v1166_v8 = vld [vmem:[%s1668_s2 + $0xb0] sm:$0xff]  ;;  %v1165_v9 = vld [vmem:[%s1668_s2 + $0xa8] sm:$0xff]  ;;  %p1380_p3 = por %p1379_p2, %p1378_p1 }
   0xe   :  { %1271 = vmatprep.subr.mxu1 %v151_v10  ;;  %1288 = vmatpush3.msra.mxu0 %v1146_v28 }
   0xf   :  { %1272 = vmatpush3.msra.mxu1 %v151_v10  ;;  %1289 = vmatprep.subr.mxu0 %v1145_v29  ;;  %v1164_v10 = vld [vmem:[%s1668_s2 + $0xa0] sm:$0xff]  ;;  %p1381_p4 = pnand %p1380_p3, %p1374_p0 }
  0x10   :  { %1273 = vmatprep.subr.mxu1 %v150_v11  ;;  %1290 = vmatpush3.msra.mxu0 %v1145_v29 }
  0x11   :  { %1274 = vmatpush3.msra.mxu1 %v150_v11  ;;  %1297 = vmatprep.subr.mxu0 %v1395_v30 }
  0x12   :  { %1275 = vmatprep.subr.mxu1 %v149_v12 }
  0x13   :  { %1276 = vmatpush3.msra.mxu1 %v149_v12 }
  0x14   :  { %1308 = vmatprep.subr.mxu1 %v1163_v3 }
  0xc4   :  { %v1257_v14 = vpop.f32.mrf.mxu0 }
  0xc5   :  { %v142_v15 = vadd.f32 %v1257_v14, %v1139_v13 }
  0xc6   :  { %v115_v16 = vpop.f32.mrf.mxu0 }
  0xc7   :  { %v141_v17 = vadd.f32 %v1139_v13, %v115_v16  ;;  %v146_v20 = vmax.f32 %v142_v15, 0.0  ;;  %v483_v15 = vlaneseq }
  0xc8   :  { %v1260_v18 = vpop.f32.mrf.mxu0 }
  0xc9   :  { %v145_v19 = vmax.f32 %v141_v17, 0.0  ;;  %v144_v21 = vadd.f32 %v1260_v18, %v1139_v13  ;;  %v484_v18 = vshrl.u32 %v483_v15, 7 }
  0xca   :  { %v125_v22 = vpop.f32.mrf.mxu0 }
  0xcb   :  { %v143_v23 = vadd.f32 %v1139_v13, %v125_v22  ;;  %1277 = vmatprep.mubr.msk.f32.mxu1 %vm157_vm2, %v145_v19  ;;  %v148_v25 = vmax.f32 %v144_v21, 0.0  ;;  %v1397_v13 = vmov 1966171168   ;;  %v1565_v26 = vsub.s32 0, %v484_v18 }
  0xcc   :  { %1278 = vmatmul.mubr.msk.f32.vlgmr.msra.gmra.mxu1 %vm157_vm2, %v146_v20  ;;  %v481_v14 = vunpack.c.l.s4 %v1397_v13  ;;  %v1158_v20 = vld [vmem:[%s1671_s5 + $0x1] ss:$0 sm:$0xff] }
  0xcd   :  { %v147_v24 = vmax.f32 %v143_v23, 0.0  ;;  %1309 = vmatpush3.msra.mxu1 %v1163_v3  ;;  %v1179_v3 = vld [vmem:[%s1668_s2 + $0xe0] sm:$0xff] }
  0xce   :  { %1310 = vmatprep.subr.mxu1 %v1162_v4  ;;  %v482_v17 = vunpack.c.0.s8 %v481_v14 }
  0xcf   :  { %1280 = vmatprep.mubr.msk.f32.mxu1 %vm157_vm2, %v147_v24  ;;  %1311 = vmatpush3.msra.mxu1 %v1162_v4 }
  0xd0   :  { %1281 = vmatmul.mubr.msk.f32.gmra.mxu1 %vm157_vm2, %v148_v25  ;;  %1312 = vmatprep.subr.mxu1 %v1161_v5  ;;  %v1562_v21 = vsub.s32 %v482_v17, %v484_v18 }
  0xd1   :  { %1313 = vmatpush3.msra.mxu1 %v1161_v5  ;;  %v1173_v5 = vld [vmem:[%s1671_s5 + $0x2] ss:$0 sm:$0xff] }
  0xd2   :  { %1314 = vmatprep.subr.mxu1 %v1160_v6 }
  0xd3   :  { %1315 = vmatpush3.msra.mxu1 %v1160_v6 }
 0x18c   :  { %v1279_v32 = vpop.f32.mrf.mxu1 }
 0x18d   :  { %v263_v33 = vadd.f32 %v1279_v32, %v1144_v31 }
 0x18e   :  { %v236_v34 = vpop.f32.mrf.mxu1 }
 0x18f   :  { %v278_v35 = vmax.f32 %v263_v33, 0.0  ;;  %v262_v36 = vadd.f32 %v1144_v31, %v236_v34 }
 0x190   :  { %v1282_v37 = vpop.f32.mrf.mxu1 }
 0x191   :  { %v277_v38 = vmax.f32 %v262_v36, 0.0  ;;  %v265_v39 = vadd.f32 %v1282_v37, %v1144_v31  ;;  %v283_v42 = vsel %vm281_vm3, %v278_v35, -inf }
 0x192   :  { %v246_v40 = vpop.f32.mrf.mxu1 }
 0x193   :  { %v282_v43 = vsel %vm281_vm3, %v277_v38, -inf  ;;  %v280_v44 = vmax.f32 %v265_v39, 0.0  ;;  %v264_v45 = vadd.f32 %v1144_v31, %v246_v40  ;;  %1291 = vmatprep.mubr.msk.f32.mxu0 %vm281_vm3, %v277_v38 }
 0x194   :  { %v284_v46 = vmax.f32 %v282_v43, %v283_v42  ;;  %1292 = vmatmul.mubr.msk.f32.vlgmr.msra.gmra.mxu0 %vm281_vm3, %v278_v35 }
 0x195   :  { %v279_v48 = vmax.f32 %v264_v45, 0.0  ;;  %1298 = vmatpush3.msra.mxu0 %v1152_v41  ;;  %v292_v51 = vsel %vm281_vm3, %v280_v44, -inf }
 0x196   :  { %v285_v49 = vrot.slane %v284_v46, 4  ;;  %1299 = vmatprep.subr.mxu0 %v1395_v30 }
 0x197   :  { %v291_v52 = vsel %vm281_vm3, %v279_v48, -inf  ;;  %1294 = vmatprep.mubr.msk.f32.mxu0 %vm281_vm3, %v279_v48  ;;  %1300 = vmatpush3.msra.mxu0 %v1151_v47 }
 0x198   :  { %v286_v53 = vmax.f32 %v284_v46, %v285_v49  ;;  %v293_v54 = vmax.f32 %v291_v52, %v292_v51  ;;  %1295 = vmatmul.mubr.msk.f32.gmra.mxu0 %vm281_vm3, %v280_v44  ;;  %1301 = vmatprep.subr.mxu0 %v1395_v30 }
 0x199   :  { %1302 = vmatpush3.msra.mxu0 %v1150_v50  ;;  %1305 = vmatprep.mubr.msk.f32.mxu0 %vm1396_vm4, %v1395_v30 }
 0x19a   :  { %v287_v56 = vrot.slane %v286_v53, 2  ;;  %v294_v57 = vrot.slane %v293_v54, 4  ;;  %1303 = vmatprep.subr.mxu0 %v1395_v30 }
 0x19b   :  { %1304 = vmatpush3.msra.mxu0 %v1149_v55 }
 0x19c   :  { %v288_v58 = vmax.f32 %v286_v53, %v287_v56  ;;  %v295_v59 = vmax.f32 %v293_v54, %v294_v57  ;;  %1322 = vmatprep.subr.mxu0 %v1395_v30 }
 0x19e   :  { %v296_v60 = vrot.slane %v295_v59, 2  ;;  %v289_v61 = vrot.slane %v288_v58, 1 }
 0x1a0   :  { %v297_v62 = vmax.f32 %v295_v59, %v296_v60  ;;  %v290_v0 = vmax.f32 %v288_v58, %v289_v61  ;;  %v1178_v60 = vld [vmem:[%s1668_s2 + $0xd8] sm:$0xff]  ;;  %v1177_v61 = vld [vmem:[%s1668_s2 + $0xd0] sm:$0xff] }
 0x1a1   :  { %1333 = vmatprep.subr.mxu1 %v1178_v60 }
 0x1a2   :  { %v298_v63 = vrot.slane %v297_v62, 1 }
 0x1a4   :  { %v299_v1 = vmax.f32 %v297_v62, %v298_v63  ;;  %v1176_v62 = vld [vmem:[%s1668_s2 + $0xc8] sm:$0xff]  ;;  %v1175_v63 = vld [vmem:[%s1668_s2 + $0xc0] sm:$0xff] }
 0x1a6   :  { %v406_v2 = vsel %vm405_vm5, %v299_v1, %v290_v0  ;;  %v1182_v0 = vld [vmem:[%s1668_s2 + $0xf8] sm:$0xff]  ;;  %v1181_v1 = vld [vmem:[%s1668_s2 + $0xf0] sm:$0xff] }
 0x1a7   :  { %1306 = vmatmul.mubr.msk.f32.vlgmr.msra.gmra.mxu0 %vm281_vm3, %v406_v2  ;;  %v1180_v2 = vld [vmem:[%s1668_s2 + $0xe8] sm:$0xff] }
 0x1a8   :  { %1330 = vmatprep.mubr.msk.f32.mxu0 %vm1396_vm4, %v1395_v30  ;;  %1323 = vmatpush3.msra.mxu0 %v1167_v7 }
 0x1a9   :  { %1324 = vmatprep.subr.mxu0 %v1395_v30 }
 0x1aa   :  { %1325 = vmatpush3.msra.mxu0 %v1166_v8 }
 0x1ab   :  { %1326 = vmatprep.subr.mxu0 %v1395_v30 }
 0x1ac   :  { %1327 = vmatpush3.msra.mxu0 %v1165_v9 }
 0x1ad   :  { %1328 = vmatprep.subr.mxu0 %v1395_v30 }
 0x1ae   :  { %1329 = vmatpush3.msra.mxu0 %v1164_v10 }
 0x1af   :  { %1347 = vmatprep.subr.mxu0 %v1395_v30 }
 0x254   :  { %v1293_v11 = vpop.f32.mrf.mxu0 }
 0x256   :  { %v378_v12 = vpop.f32.mrf.mxu0 }
 0x258   :  { %v1296_v16 = vpop.f32.mrf.mxu0 }
 0x25a   :  { %v388_v19 = vpop.f32.mrf.mxu0 }
 0x267   :  { %v475_v22 = vpop.f32.mrf.mxu0 }
 0x268   :  { %v476_v23 = vadd.f32 %v1158_v20, %v475_v22 }
 0x269   :  { %v1307_v24 = vpop.f32.mrf.mxu0 }
 0x26a   :  { %v486_v25 = vrot.slane %v476_v23, %v1562_v21 }
 0x26c   :  { %v487_v27 = vcombine.high %v486_v25, %v486_v25  ;;  %v494_v28 = vrot.slane %v486_v25, %v1562_v21 }
 0x26e   :  { %v501_v29 = vrot.slane %v487_v27, %v1562_v21  ;;  %v505_v31 = vrot.slane %v494_v28, %v1565_v26 }
 0x270   :  { %v509_v32 = vrot.slane %v501_v29, %v1565_v26  ;;  %v513_v33 = vadd.f32 %v1293_v11, %v505_v31  ;;  %v512_v34 = vadd.f32 %v505_v31, %v378_v12 }
 0x272   :  { %v528_v35 = vmax.f32 %v513_v33, 0.0  ;;  %v527_v36 = vmax.f32 %v512_v34, 0.0  ;;  %v514_v37 = vadd.f32 %v509_v32, %v388_v19  ;;  %v515_v38 = vadd.f32 %v1296_v16, %v509_v32 }
 0x274   :  { %v532_v39 = vsel %vm281_vm3, %v528_v35, -inf  ;;  %v531_v40 = vsel %vm281_vm3, %v527_v36, -inf  ;;  %1316 = vmatprep.mubr.msk.f32.mxu1 %vm281_vm3, %v527_v36  ;;  %v529_v41 = vmax.f32 %v514_v37, 0.0  ;;  %v530_v42 = vmax.f32 %v515_v38, 0.0 }
 0x275   :  { %v533_v43 = vmax.f32 %v531_v40, %v532_v39  ;;  %1317 = vmatmul.mubr.msk.f32.vlgmr.msra.gmra.mxu1 %vm281_vm3, %v528_v35 }
 0x276   :  { %v540_v44 = vsel %vm281_vm3, %v529_v41, -inf  ;;  %1319 = vmatprep.mubr.msk.f32.mxu1 %vm281_vm3, %v529_v41  ;;  %v541_v45 = vsel %vm281_vm3, %v530_v42, -inf  ;;  %1334 = vmatpush3.msra.mxu1 %v1178_v60 }
 0x277   :  { %v534_v46 = vrot.slane %v533_v43, 4  ;;  %v542_v47 = vmax.f32 %v540_v44, %v541_v45  ;;  %1335 = vmatprep.subr.mxu1 %v1177_v61 }
 0x278   :  { %1336 = vmatpush3.msra.mxu1 %v1177_v61 }
 0x279   :  { %v535_v48 = vmax.f32 %v533_v43, %v534_v46  ;;  %v543_v49 = vrot.slane %v542_v47, 4  ;;  %1320 = vmatmul.mubr.msk.f32.gmra.mxu1 %vm281_vm3, %v530_v42  ;;  %1337 = vmatprep.subr.mxu1 %v1176_v62 }
 0x27a   :  { %1338 = vmatpush3.msra.mxu1 %v1176_v62 }
 0x27b   :  { %v544_v50 = vmax.f32 %v542_v47, %v543_v49  ;;  %v536_v51 = vrot.slane %v535_v48, 2  ;;  %1339 = vmatprep.subr.mxu1 %v1175_v63  ;;  %v1034_v49 = vld [vmem:[%s1669_s3 + $0x10] sm:$0xff] }
 0x27c   :  { %1340 = vmatpush3.msra.mxu1 %v1175_v63 }
 0x27d   :  { %v537_v52 = vmax.f32 %v535_v48, %v536_v51  ;;  %v545_v53 = vrot.slane %v544_v50, 2  ;;  %1358 = vmatprep.subr.mxu1 %v1395_v30  ;;  %v1035_v48 = vld [vmem:[%s1669_s3 + $0x18] sm:$0xff]  ;;  %v1032_v51 = vld [vmem:[%s1669_s3] sm:$0xff] }
 0x27f   :  { %v538_v54 = vrot.slane %v537_v52, 1  ;;  %v546_v55 = vmax.f32 %v544_v50, %v545_v53  ;;  %v1033_v50 = vld [vmem:[%s1669_s3 + $0x8] sm:$0xff]  ;;  %v1188_v53 = vld [vmem:[%s1671_s5 + $0x3] ss:$0 sm:$0xff] }
 0x281   :  { %v547_v56 = vrot.slane %v546_v55, 1  ;;  %v539_v57 = vmax.f32 %v537_v52, %v538_v54 }
 0x283   :  { %v548_v58 = vmax.f32 %v546_v55, %v547_v56 }
 0x285   :  { %v654_v59 = vsel %vm405_vm5, %v548_v58, %v539_v57 }
 0x286   :  { %1331 = vmatmul.mubr.msk.f32.vlgmr.msra.gmra.mxu0 %vm281_vm3, %v654_v59 }
 0x287   :  { %1355 = vmatprep.mubr.msk.f32.mxu0 %vm1396_vm4, %v1395_v30  ;;  %1348 = vmatpush3.msra.mxu0 %v1182_v0 }
 0x288   :  { %1349 = vmatprep.subr.mxu0 %v1395_v30 }
 0x289   :  { %1350 = vmatpush3.msra.mxu0 %v1181_v1 }
 0x28a   :  { %1351 = vmatprep.subr.mxu0 %v1395_v30 }
 0x28b   :  { %1352 = vmatpush3.msra.mxu0 %v1180_v2 }
 0x28c   :  { %1353 = vmatprep.subr.mxu0 %v1395_v30 }
 0x28d   :  { %1354 = vmatpush3.msra.mxu0 %v1179_v3 }
 0x335   :  { %v1318_v4 = vpop.f32.mrf.mxu1 }
 0x337   :  { %v627_v8 = vpop.f32.mrf.mxu1 }
 0x339   :  { %v1321_v13 = vpop.f32.mrf.mxu1 }
 0x33b   :  { %v637_v19 = vpop.f32.mrf.mxu1 }
 0x346   :  { %v723_v6 = vpop.f32.mrf.mxu0 }
 0x347   :  { %v724_v7 = vadd.f32 %v1173_v5, %v723_v6 }
 0x348   :  { %v1332_v9 = vpop.f32.mrf.mxu0 }
 0x349   :  { %v734_v10 = vrot.slane %v724_v7, %v1562_v21 }
 0x34b   :  { %v735_v11 = vcombine.high %v734_v10, %v734_v10  ;;  %v742_v12 = vrot.slane %v734_v10, %v1562_v21 }
 0x34d   :  { %v749_v14 = vrot.slane %v735_v11, %v1562_v21  ;;  %v753_v15 = vrot.slane %v742_v12, %v1565_v26 }
 0x34f   :  { %v757_v16 = vrot.slane %v749_v14, %v1565_v26  ;;  %v761_v17 = vadd.f32 %v1318_v4, %v753_v15  ;;  %v760_v18 = vadd.f32 %v753_v15, %v627_v8 }
 0x351   :  { %v776_v20 = vmax.f32 %v761_v17, 0.0  ;;  %v775_v22 = vmax.f32 %v760_v18, 0.0  ;;  %v762_v23 = vadd.f32 %v757_v16, %v637_v19  ;;  %v763_v24 = vadd.f32 %v1321_v13, %v757_v16 }
 0x353   :  { %v780_v25 = vsel %vm281_vm3, %v776_v20, -inf  ;;  %v779_v27 = vsel %vm281_vm3, %v775_v22, -inf  ;;  %1341 = vmatprep.mubr.msk.f32.mxu1 %vm281_vm3, %v775_v22  ;;  %v777_v28 = vmax.f32 %v762_v23, 0.0  ;;  %v778_v29 = vmax.f32 %v763_v24, 0.0 }
 0x354   :  { %v781_v31 = vmax.f32 %v779_v27, %v780_v25  ;;  %1342 = vmatmul.mubr.msk.f32.vlgmr.msra.gmra.mxu1 %vm281_vm3, %v776_v20  ;;  %v1190_v25 = vld [vmem:[%s1672_s6] ss:$0 sm:$0xff] }
 0x355   :  { %v788_v32 = vsel %vm281_vm3, %v777_v28, -inf  ;;  %1344 = vmatprep.mubr.msk.f32.mxu1 %vm281_vm3, %v777_v28  ;;  %v789_v33 = vsel %vm281_vm3, %v778_v29, -inf  ;;  %1359 = vmatpush3.msra.mxu1 %v1035_v48 }
 0x356   :  { %v782_v34 = vrot.slane %v781_v31, 4  ;;  %v790_v35 = vmax.f32 %v788_v32, %v789_v33  ;;  %1360 = vmatprep.subr.mxu1 %v1395_v30 }
 0x357   :  { %1361 = vmatpush3.msra.mxu1 %v1034_v49 }
 0x358   :  { %v783_v36 = vmax.f32 %v781_v31, %v782_v34  ;;  %v791_v37 = vrot.slane %v790_v35, 4  ;;  %1345 = vmatmul.mubr.msk.f32.gmra.mxu1 %vm281_vm3, %v778_v29  ;;  %1362 = vmatprep.subr.mxu1 %v1395_v30 }
 0x359   :  { %1366 = vmatprep.mubr.msk.f32.mxu1 %vm1396_vm4, %v1395_v30  ;;  %1363 = vmatpush3.msra.mxu1 %v1033_v50 }
 0x35a   :  { %v792_v38 = vmax.f32 %v790_v35, %v791_v37  ;;  %v784_v39 = vrot.slane %v783_v36, 2  ;;  %1364 = vmatprep.subr.mxu1 %v1395_v30 }
 0x35b   :  { %1365 = vmatpush3.msra.mxu1 %v1032_v51 }
 0x35c   :  { %v785_v40 = vmax.f32 %v783_v36, %v784_v39  ;;  %v793_v41 = vrot.slane %v792_v38, 2 }
 0x35e   :  { %v786_v42 = vrot.slane %v785_v40, 1  ;;  %v794_v43 = vmax.f32 %v792_v38, %v793_v41 }
 0x360   :  { %v795_v44 = vrot.slane %v794_v43, 1  ;;  %v787_v45 = vmax.f32 %v785_v40, %v786_v42 }
 0x362   :  { %v796_v46 = vmax.f32 %v794_v43, %v795_v44 }
 0x364   :  { %v902_v47 = vsel %vm405_vm5, %v796_v46, %v787_v45 }
 0x365   :  { %1356 = vmatmul.mubr.msk.f32.vlgmr.msra.gmra.mxu0 %vm281_vm3, %v902_v47 }
 0x414   :  { %v1343_v52 = vpop.f32.mrf.mxu1 }
 0x416   :  { %v875_v56 = vpop.f32.mrf.mxu1 }
 0x418   :  { %v1346_v61 = vpop.f32.mrf.mxu1 }
 0x41a   :  { %v885_v2 = vpop.f32.mrf.mxu1 }
 0x425   :  { %v971_v54 = vpop.f32.mrf.mxu0 }
 0x426   :  { %v972_v55 = vadd.f32 %v1188_v53, %v971_v54 }
 0x427   :  { %v1357_v57 = vpop.f32.mrf.mxu0 }
 0x428   :  { %v982_v58 = vrot.slane %v972_v55, %v1562_v21 }
 0x42a   :  { %v983_v59 = vcombine.high %v982_v58, %v982_v58  ;;  %v990_v60 = vrot.slane %v982_v58, %v1562_v21 }
 0x42c   :  { %v997_v62 = vrot.slane %v983_v59, %v1562_v21  ;;  %v1001_v30 = vrot.slane %v990_v60, %v1565_v26 }
 0x42e   :  { %v1005_v63 = vrot.slane %v997_v62, %v1565_v26  ;;  %v1008_v0 = vadd.f32 %v1001_v30, %v875_v56  ;;  %v1009_v1 = vadd.f32 %v1343_v52, %v1001_v30 }
 0x430   :  { %v1010_v3 = vadd.f32 %v1005_v63, %v885_v2  ;;  %v1011_v4 = vadd.f32 %v1346_v61, %v1005_v63  ;;  %v1012_v5 = vsel %vm281_vm3, %v1008_v0, -inf  ;;  %v1013_v6 = vsel %vm281_vm3, %v1009_v1, -inf }
 0x431   :  { %v1014_v7 = vmax.f32 %v1012_v5, %v1013_v6 }
 0x432   :  { %v1021_v8 = vsel %vm281_vm3, %v1010_v3, -inf  ;;  %v1022_v9 = vsel %vm281_vm3, %v1011_v4, -inf }
 0x433   :  { %v1015_v10 = vrot.slane %v1014_v7, 4  ;;  %v1023_v21 = vmax.f32 %v1021_v8, %v1022_v9 }
 0x435   :  { %v1016_v11 = vmax.f32 %v1014_v7, %v1015_v10  ;;  %v1024_v12 = vrot.slane %v1023_v21, 4 }
 0x437   :  { %v1017_v13 = vrot.slane %v1016_v11, 2  ;;  %v1025_v26 = vmax.f32 %v1023_v21, %v1024_v12 }
 0x439   :  { %v1018_v14 = vmax.f32 %v1016_v11, %v1017_v13  ;;  %v1026_v15 = vrot.slane %v1025_v26, 2 }
 0x43b   :  { %v1019_v16 = vrot.slane %v1018_v14, 1  ;;  %v1027_v17 = vmax.f32 %v1025_v26, %v1026_v15 }
 0x43d   :  { %v1020_v18 = vmax.f32 %v1018_v14, %v1019_v16  ;;  %v1028_v19 = vrot.slane %v1027_v17, 1 }
 0x43f   :  { %v1029_v20 = vmax.f32 %v1027_v17, %v1028_v19  ;;  %v1030_v22 = vmax.f32 %v1020_v18, 0.0 }
 0x441   :  { %v1031_v23 = vmax.f32 %v1029_v20, 0.0 }
 0x443   :  { %v1045_v24 = vsel %vm405_vm5, %v1031_v23, %v1030_v22 }
 0x444   :  { %1367 = vmatmul.mubr.msk.f32.vlgmr.msra.gmra.mxu1 %vm281_vm3, %v1045_v24 }
 0x504   :  { %v1114_v27 = vpop.f32.mrf.mxu1 }
 0x505   :  { %v1115_v28 = vadd.f32 %v1190_v25, %v1114_v27 }
 0x506   :  { %v1368_v29 = vpop.f32.mrf.mxu1 }
 0x507   :  { %1119 = vst.msk [vmem:[#allocation2] sm:$0x3] %vm1118_vm6, %v1115_v28 }
 0x508   :  { %1384 = shalt.err (!%p1381_p4)
}
 0x509   :  { %1129 = dma.vmem_to_hbm [thread:$0]  %s1127_s14, 32, %s1673_s7, [#allocation3]  }
 0x50a   :  { %1393 = dma.done.wait [#allocation3], 32  }
 0x50b   :  { %1394 = vsyncadd [#allocation3], 4294967264 }
 0x50c   :  { %1133 = vsyncpa [#allocation3], 1 }

</bundles_post_ra>
